<compile_context>
chip_gen: v6e
topology: v6e:2x2x1
jax: 0.10.0
libtpu: 0.0.40
codegen_flags: <defaults>
</compile_context>

<pallas_src>
import functools

import jax
import jax.numpy as jnp
from jax.experimental import pallas as pl
from jax.experimental.pallas import tpu as pltpu


def _round_up(x, m):
    return ((x + m - 1) // m) * m


# --------------------------------------------------------------------------
# Fused Pallas kernel: whole Bottleneck for one sample, [C, M] layout
# --------------------------------------------------------------------------
def _bottleneck_kernel(H, W,
                       x_ref, w1_ref, b1_ref,
                       w2s_ref, b2_ref, smask_ref,
                       w2t_ref, b3_ref,
                       w3_ref, b4_ref,
                       o_ref, s1_ref, s2_ref):
    M = x_ref.shape[1]
    HW = H * W
    LPAD_S = _round_up(W + 1, 128)     # spatial halo (store stays lane-aligned)
    LPAD_T = _round_up(HW, 128)        # temporal halo

    x = x_ref[...].astype(jnp.float32)                                # [Cin, M]

    # -- stage 1: conv1 (1x1x1, BN folded) + ReLU ---------------------------
    y = jnp.dot(w1_ref[...], x, preferred_element_type=jnp.float32)
    y = jnp.maximum(y + b1_ref[...], 0.0)                             # [planes, M]

    # -- stage 2: conv2_s (1,3,3), pad (0,1,1): 9 shifted-tap matmuls -------
    s1_ref[...] = jnp.zeros_like(s1_ref)                              # zero halos
    s1_ref[:, LPAD_S:LPAD_S + M] = y
    mid = s2_ref.shape[0]
    acc = jnp.zeros((mid, M), jnp.float32)
    for kh in range(3):
        for kw in range(3):
            tap = kh * 3 + kw
            off = (kh - 1) * W + (kw - 1)
            shifted = s1_ref[:, LPAD_S + off:LPAD_S + off + M]        # [planes, M]
            shifted = shifted * smask_ref[tap]                        # [1, M] bcast
            acc = acc + jnp.dot(w2s_ref[tap], shifted,
                                preferred_element_type=jnp.float32)
    y = jnp.maximum(acc + b2_ref[...], 0.0)                           # [mid, M]

    # -- stage 3: conv2_t (3,1,1), pad (1,0,0): 3 shifted-tap matmuls -------
    # (temporal shifts are whole frames, so the zero halo alone implements the
    #  zero padding exactly; no mask needed)
    s2_ref[...] = jnp.zeros_like(s2_ref)
    s2_ref[:, LPAD_T:LPAD_T + M] = y
    planes = w1_ref.shape[0]
    acc = jnp.zeros((planes, M), jnp.float32)
    for kt in range(3):
        off = (kt - 1) * HW
        shifted = s2_ref[:, LPAD_T + off:LPAD_T + off + M]            # [mid, M]
        acc = acc + jnp.dot(w2t_ref[kt], shifted,
                            preferred_element_type=jnp.float32)
    y = jnp.maximum(acc + b3_ref[...], 0.0)                           # [planes, M]

    # -- stage 4: conv3 (1x1x1, BN folded) + residual + ReLU ----------------
    y = jnp.dot(w3_ref[...], y, preferred_element_type=jnp.float32)
    y = jnp.maximum(y + b4_ref[...] + x, 0.0)                         # [Cout, M]
    o_ref[...] = y.astype(o_ref.dtype)


# --------------------------------------------------------------------------
# Parameter helpers
# --------------------------------------------------------------------------
def get_mid_planes(planes, inplanes=None):
    if inplanes is None:
        inplanes = planes
    n_3d = inplanes * planes * 3 * 3 * 3
    n_2p1d = inplanes * 3 * 3 + 3 * planes
    return n_3d // n_2p1d


def fold_bn(gamma, beta, mean, var, eps=1e-5):
    scale = gamma / jnp.sqrt(var + eps)
    return scale, beta - mean * scale


def make_bn_params(key, c):
    k1, k2, k3, k4 = jax.random.split(key, 4)
    gamma = 1.0 + 0.1 * jax.random.normal(k1, (c,), jnp.float32)
    beta = 0.05 * jax.random.normal(k2, (c,), jnp.float32)
    mean = 0.02 * jax.random.normal(k3, (c,), jnp.float32)
    var = 0.5 + jax.random.uniform(k4, (c,), jnp.float32)
    return gamma, beta, mean, var


# --------------------------------------------------------------------------
# Wrapper: NCDHW in, NCDHW out (PyTorch layout); all conv/BN fused in 1 kernel
# --------------------------------------------------------------------------
def bottleneck_pallas(x, p):
    """x: [N, Cin, D, H, W] (NCDHW). stride=1, downsample=None, eval-mode BN."""
    N, Cin, D, H, W = x.shape
    M = D * H * W
    planes = p["w1"].shape[0]
    mid = p["w2s"].shape[0]
    Cout = p["w3"].shape[0]
    assert Cin == Cout, "residual requires Cin == planes*expansion (stride=1, no downsample)"
    # TODO(synk): stride != 1 and downsample path of the PyTorch module are not implemented.

    s1, b1 = fold_bn(*p["bn1"])
    s2, b2 = fold_bn(*p["bn2s"])
    s3, b3 = fold_bn(*p["bn2t"])
    s4, b4 = fold_bn(*p["bn3"])

    # Fold BN scales into transposed weight matrices (trace-time, tiny).
    w1t = p["w1"][:, :, 0, 0, 0] * s1[:, None]                              # [planes, Cin]
    w2st = jnp.transpose(p["w2s"][:, :, 0, :, :], (2, 3, 0, 1))             # [3,3,mid,planes]
    w2st = w2st.reshape(9, mid, planes) * s2[None, :, None]                 # [9, mid, planes]
    w2tt = jnp.transpose(p["w2t"][:, :, :, 0, 0], (2, 0, 1)) * s3[None, :, None]  # [3,planes,mid]
    w3t = p["w3"][:, :, 0, 0, 0] * s4[:, None]                              # [Cout, planes]

    # Precomputed 0/1 validity masks for the 9 spatial taps (static).
    m_idx = jnp.arange(M, dtype=jnp.int32)
    w_idx = m_idx % W
    h_idx = (m_idx // W) % H
    smask = []
    for kh in range(3):
        for kw in range(3):
            hv, wv = h_idx + (kh - 1), w_idx + (kw - 1)
            smask.append((hv >= 0) & (hv < H) & (wv >= 0) & (wv < W))
    smask = jnp.stack(smask).astype(jnp.float32).reshape(9, 1, M)

    kernel = functools.partial(_bottleneck_kernel, H, W)
    const2 = lambda n: (0, 0)
    const3 = lambda n: (0, 0, 0)
    lpad_s = _round_up(W + 1, 128)
    lpad_t = _round_up(H * W, 128)

    out = pl.pallas_call(
        kernel,
        out_shape=jax.ShapeDtypeStruct((N, Cout, M), x.dtype),
        grid=(N,),
        in_specs=[
            pl.BlockSpec((None, Cin, M), lambda n: (n, 0, 0)),   # x (also residual)
            pl.BlockSpec((planes, Cin), const2),                 # w1 * bn1.scale
            pl.BlockSpec((planes, 1), const2),                   # bn1 bias
            pl.BlockSpec((9, mid, planes), const3),              # w2_s taps * bn2s.scale
            pl.BlockSpec((mid, 1), const2),                      # bn2s bias
            pl.BlockSpec((9, 1, M), const3),                     # spatial tap masks
            pl.BlockSpec((3, planes, mid), const3),              # w2_t taps * bn2t.scale
            pl.BlockSpec((planes, 1), const2),                   # bn2t bias
            pl.BlockSpec((Cout, planes), const2),                # w3 * bn3.scale
            pl.BlockSpec((Cout, 1), const2),                     # bn3 bias
        ],
        out_specs=pl.BlockSpec((None, Cout, M), lambda n: (n, 0, 0)),
        scratch_shapes=[
            pltpu.VMEM((planes, M + 2 * lpad_s), jnp.float32),   # haloed conv1 output
            pltpu.VMEM((mid, M + 2 * lpad_t), jnp.float32),      # haloed conv2_s output
        ],
        compiler_params=pltpu.CompilerParams(
            dimension_semantics=("parallel",)),
    )(x.reshape(N, Cin, M), w1t, b1.reshape(planes, 1),
      w2st, b2.reshape(mid, 1), smask,
      w2tt, b3.reshape(planes, 1),
      w3t, b4.reshape(Cout, 1))
    return out.reshape(N, Cout, D, H, W)


# --------------------------------------------------------------------------
# Pure-JAX reference (NCDHW, eval-mode BN)
# --------------------------------------------------------------------------
def bn_ref(x, gamma, beta, mean, var, eps=1e-5):
    shp = (1, -1, 1, 1, 1)
    return ((x - mean.reshape(shp)) * (gamma.reshape(shp) / jnp.sqrt(var.reshape(shp) + eps))
            + beta.reshape(shp))


def bottleneck_reference(x, p):
    def conv(z, w, pad):
        return jax.lax.conv_general_dilated(
            z, w, (1, 1, 1), pad,
            dimension_numbers=("NCDHW", "OIDHW", "NCDHW"),
            precision=jax.lax.Precision.HIGHEST)

    out = conv(x, p["w1"], [(0, 0), (0, 0), (0, 0)])
    out = jnp.maximum(bn_ref(out, *p["bn1"]), 0.0)
    out = conv(out, p["w2s"], [(0, 0), (1, 1), (1, 1)])
    out = jnp.maximum(bn_ref(out, *p["bn2s"]), 0.0)
    out = conv(out, p["w2t"], [(1, 1), (0, 0), (0, 0)])
    out = jnp.maximum(bn_ref(out, *p["bn2t"]), 0.0)
    out = conv(out, p["w3"], [(0, 0), (0, 0), (0, 0)])
    out = bn_ref(out, *p["bn3"]) + x
    return jnp.maximum(out, 0.0)


# --------------------------------------------------------------------------
if __name__ == "__main__":
    key = jax.random.PRNGKey(0)
    inplanes, planes, expansion = 16, 4, 4   # inplanes == planes*expansion, stride=1, downsample=None
    mid = get_mid_planes(planes)             # = 9
    N, D, H, W = 2, 4, 8, 8

    ks = jax.random.split(key, 10)
    x = jax.random.normal(ks[0], (N, inplanes, D, H, W), jnp.float32)   # PyTorch NCDHW

    params = {
        # conv weights in PyTorch OIDHW layout (Cout, Cin, kd, kh, kw), bias=False
        "w1":  0.1 * jax.random.normal(ks[1], (planes, inplanes, 1, 1, 1), jnp.float32),
        "w2s": 0.1 * jax.random.normal(ks[2], (mid, planes, 1, 3, 3), jnp.float32),
        "w2t": 0.1 * jax.random.normal(ks[3], (planes, mid, 3, 1, 1), jnp.float32),
        "w3":  0.1 * jax.random.normal(ks[4], (planes * expansion, planes, 1, 1, 1), jnp.float32),
        # BatchNorm3d (gamma, beta, running_mean, running_var), inference mode
        "bn1":  make_bn_params(ks[5], planes),
        "bn2s": make_bn_params(ks[6], mid),
        "bn2t": make_bn_params(ks[7], planes),
        "bn3":  make_bn_params(ks[8], planes * expansion),
    }
    # TODO(synk): training-mode BatchNorm (batch statistics) not implemented; BN is folded (eval mode).

    out = jax.jit(bottleneck_pallas)(x, params)
    out = jax.block_until_ready(out)

    ref = bottleneck_reference(x, params)
    assert out.shape == (N, planes * expansion, D, H, W)
    assert bool(jnp.allclose(out, ref, atol=2e-2, rtol=2e-2)), "Pallas output mismatch vs reference"

    print("KERNEL_OK")
</pallas_src>

<mosaic_0001>
module attributes {stable_mosaic.version = 11 : i64} {
  func.func @_bottleneck_kernel(%arg0: i32, %arg1: memref<1x16x256xf32, #tpu.memory_space<vmem>>, %arg2: memref<4x16xf32, #tpu.memory_space<vmem>>, %arg3: memref<4x1xf32, #tpu.memory_space<vmem>>, %arg4: memref<9x9x4xf32, #tpu.memory_space<vmem>>, %arg5: memref<9x1xf32, #tpu.memory_space<vmem>>, %arg6: memref<9x1x256xf32, #tpu.memory_space<vmem>>, %arg7: memref<3x4x9xf32, #tpu.memory_space<vmem>>, %arg8: memref<4x1xf32, #tpu.memory_space<vmem>>, %arg9: memref<16x4xf32, #tpu.memory_space<vmem>>, %arg10: memref<16x1xf32, #tpu.memory_space<vmem>>, %arg11: memref<1x16x256xf32, #tpu.memory_space<vmem>>, %arg12: memref<4x512xf32, #tpu.memory_space<vmem>>, %arg13: memref<9x512xf32, #tpu.memory_space<vmem>>) attributes {dimension_semantics = [#tpu.dimension_semantics<parallel>], iteration_bounds = array<i64: 2>, scalar_prefetch = 0 : i64, scratch_operands = 2 : i64, tpu.core_type = #tpu.core_type<tc>, window_params = [{transform_indices = @transform_0, window_bounds = array<i64: 1, 16, 256>}, {pipeline_mode = #tpu.pipeline_mode<synchronous>, transform_indices = @transform_1, window_bounds = array<i64: 4, 16>}, {pipeline_mode = #tpu.pipeline_mode<synchronous>, transform_indices = @transform_2, window_bounds = array<i64: 4, 1>}, {pipeline_mode = #tpu.pipeline_mode<synchronous>, transform_indices = @transform_3, window_bounds = array<i64: 9, 9, 4>}, {pipeline_mode = #tpu.pipeline_mode<synchronous>, transform_indices = @transform_4, window_bounds = array<i64: 9, 1>}, {pipeline_mode = #tpu.pipeline_mode<synchronous>, transform_indices = @transform_5, window_bounds = array<i64: 9, 1, 256>}, {pipeline_mode = #tpu.pipeline_mode<synchronous>, transform_indices = @transform_6, window_bounds = array<i64: 3, 4, 9>}, {pipeline_mode = #tpu.pipeline_mode<synchronous>, transform_indices = @transform_7, window_bounds = array<i64: 4, 1>}, {pipeline_mode = #tpu.pipeline_mode<synchronous>, transform_indices = @transform_8, window_bounds = array<i64: 16, 4>}, {pipeline_mode = #tpu.pipeline_mode<synchronous>, transform_indices = @transform_9, window_bounds = array<i64: 16, 1>}, {transform_indices = @transform_10, window_bounds = array<i64: 1, 16, 256>}]} {
    %c0 = arith.constant 0 : index
    %c0_0 = arith.constant 0 : index
    %c0_1 = arith.constant 0 : index
    %0 = vector.load %arg1[%c0, %c0_0, %c0_1] : memref<1x16x256xf32, #tpu.memory_space<vmem>>, vector<1x16x256xf32>
    %1 = vector.shape_cast %0 : vector<1x16x256xf32> to vector<16x256xf32>
    %c0_2 = arith.constant 0 : index
    %c0_3 = arith.constant 0 : index
    %2 = vector.load %arg2[%c0_2, %c0_3] : memref<4x16xf32, #tpu.memory_space<vmem>>, vector<4x16xf32>
    %cst = arith.constant dense<0.000000e+00> : vector<4x256xf32>
    %3 = tpu.matmul %2, %1, %cst {dimension_numbers = #tpu.dot_dimension_numbers<[1], [0], [0], [1], [0, 0, 1, 1], [], []>} : vector<4x16xf32>, vector<16x256xf32>, vector<4x256xf32> -> vector<4x256xf32>
    %c0_4 = arith.constant 0 : index
    %c0_5 = arith.constant 0 : index
    %4 = vector.load %arg3[%c0_4, %c0_5] : memref<4x1xf32, #tpu.memory_space<vmem>>, vector<4x1xf32>
    %5 = vector.broadcast %4 : vector<4x1xf32> to vector<4x256xf32>
    %6 = arith.addf %3, %5 : vector<4x256xf32>
    %cst_6 = arith.constant 0.000000e+00 : f32
    %7 = vector.broadcast %cst_6 : f32 to vector<4x256xf32>
    %8 = arith.maximumf %6, %7 : vector<4x256xf32>
    %cst_7 = arith.constant 0.000000e+00 : f32
    %9 = vector.broadcast %cst_7 : f32 to vector<4x512xf32>
    %c0_8 = arith.constant 0 : index
    %c0_9 = arith.constant 0 : index
    %10 = vector.load %arg12[%c0_8, %c0_9] : memref<4x512xf32, #tpu.memory_space<vmem>>, vector<4x512xf32>
    tpu.vector_store %arg12[%c0_8, %c0_9], %9 {strides = array<i32>} : memref<4x512xf32, #tpu.memory_space<vmem>>, vector<4x512xf32>,
    %c0_10 = arith.constant 0 : index
    %c128 = arith.constant 128 : index
    %11 = vector.load %arg12[%c0_10, %c128] : memref<4x512xf32, #tpu.memory_space<vmem>>, vector<4x256xf32>
    tpu.vector_store %arg12[%c0_10, %c128], %8 {strides = array<i32>} : memref<4x512xf32, #tpu.memory_space<vmem>>, vector<4x256xf32>,
    %cst_11 = arith.constant 0.000000e+00 : f32
    %12 = vector.broadcast %cst_11 : f32 to vector<9x256xf32>
    %c0_12 = arith.constant 0 : index
    %c119 = arith.constant 119 : index
    %13 = vector.load %arg12[%c0_12, %c119] : memref<4x512xf32, #tpu.memory_space<vmem>>, vector<4x256xf32>
    %c0_13 = arith.constant 0 : index
    %c0_14 = arith.constant 0 : index
    %c0_15 = arith.constant 0 : index
    %14 = vector.load %arg6[%c0_13, %c0_14, %c0_15] : memref<9x1x256xf32, #tpu.memory_space<vmem>>, vector<1x1x256xf32>
    %15 = vector.shape_cast %14 : vector<1x1x256xf32> to vector<1x256xf32>
    %16 = vector.broadcast %15 : vector<1x256xf32> to vector<4x256xf32>
    %17 = arith.mulf %13, %16 : vector<4x256xf32>
    %c0_16 = arith.constant 0 : index
    %c0_17 = arith.constant 0 : index
    %c0_18 = arith.constant 0 : index
    %18 = vector.load %arg4[%c0_16, %c0_17, %c0_18] : memref<9x9x4xf32, #tpu.memory_space<vmem>>, vector<1x9x4xf32>
    %19 = vector.shape_cast %18 : vector<1x9x4xf32> to vector<9x4xf32>
    %cst_19 = arith.constant dense<0.000000e+00> : vector<9x256xf32>
    %20 = tpu.matmul %19, %17, %cst_19 {dimension_numbers = #tpu.dot_dimension_numbers<[1], [0], [0], [1], [0, 0, 1, 1], [], []>} : vector<9x4xf32>, vector<4x256xf32>, vector<9x256xf32> -> vector<9x256xf32>
    %21 = arith.addf %12, %20 : vector<9x256xf32>
    %c0_20 = arith.constant 0 : index
    %c120 = arith.constant 120 : index
    %22 = vector.load %arg12[%c0_20, %c120] : memref<4x512xf32, #tpu.memory_space<vmem>>, vector<4x256xf32>
    %c1 = arith.constant 1 : index
    %c0_21 = arith.constant 0 : index
    %c0_22 = arith.constant 0 : index
    %23 = vector.load %arg6[%c1, %c0_21, %c0_22] : memref<9x1x256xf32, #tpu.memory_space<vmem>>, vector<1x1x256xf32>
    %24 = vector.shape_cast %23 : vector<1x1x256xf32> to vector<1x256xf32>
    %25 = vector.broadcast %24 : vector<1x256xf32> to vector<4x256xf32>
    %26 = arith.mulf %22, %25 : vector<4x256xf32>
    %c1_23 = arith.constant 1 : index
    %c0_24 = arith.constant 0 : index
    %c0_25 = arith.constant 0 : index
    %27 = vector.load %arg4[%c1_23, %c0_24, %c0_25] : memref<9x9x4xf32, #tpu.memory_space<vmem>>, vector<1x9x4xf32>
    %28 = vector.shape_cast %27 : vector<1x9x4xf32> to vector<9x4xf32>
    %cst_26 = arith.constant dense<0.000000e+00> : vector<9x256xf32>
    %29 = tpu.matmul %28, %26, %cst_26 {dimension_numbers = #tpu.dot_dimension_numbers<[1], [0], [0], [1], [0, 0, 1, 1], [], []>} : vector<9x4xf32>, vector<4x256xf32>, vector<9x256xf32> -> vector<9x256xf32>
    %30 = arith.addf %21, %29 : vector<9x256xf32>
    %c0_27 = arith.constant 0 : index
    %c121 = arith.constant 121 : index
    %31 = vector.load %arg12[%c0_27, %c121] : memref<4x512xf32, #tpu.memory_space<vmem>>, vector<4x256xf32>
    %c2 = arith.constant 2 : index
    %c0_28 = arith.constant 0 : index
    %c0_29 = arith.constant 0 : index
    %32 = vector.load %arg6[%c2, %c0_28, %c0_29] : memref<9x1x256xf32, #tpu.memory_space<vmem>>, vector<1x1x256xf32>
    %33 = vector.shape_cast %32 : vector<1x1x256xf32> to vector<1x256xf32>
    %34 = vector.broadcast %33 : vector<1x256xf32> to vector<4x256xf32>
    %35 = arith.mulf %31, %34 : vector<4x256xf32>
    %c2_30 = arith.constant 2 : index
    %c0_31 = arith.constant 0 : index
    %c0_32 = arith.constant 0 : index
    %36 = vector.load %arg4[%c2_30, %c0_31, %c0_32] : memref<9x9x4xf32, #tpu.memory_space<vmem>>, vector<1x9x4xf32>
    %37 = vector.shape_cast %36 : vector<1x9x4xf32> to vector<9x4xf32>
    %cst_33 = arith.constant dense<0.000000e+00> : vector<9x256xf32>
    %38 = tpu.matmul %37, %35, %cst_33 {dimension_numbers = #tpu.dot_dimension_numbers<[1], [0], [0], [1], [0, 0, 1, 1], [], []>} : vector<9x4xf32>, vector<4x256xf32>, vector<9x256xf32> -> vector<9x256xf32>
    %39 = arith.addf %30, %38 : vector<9x256xf32>
    %c0_34 = arith.constant 0 : index
    %c127 = arith.constant 127 : index
    %40 = vector.load %arg12[%c0_34, %c127] : memref<4x512xf32, #tpu.memory_space<vmem>>, vector<4x256xf32>
    %c3 = arith.constant 3 : index
    %c0_35 = arith.constant 0 : index
    %c0_36 = arith.constant 0 : index
    %41 = vector.load %arg6[%c3, %c0_35, %c0_36] : memref<9x1x256xf32, #tpu.memory_space<vmem>>, vector<1x1x256xf32>
    %42 = vector.shape_cast %41 : vector<1x1x256xf32> to vector<1x256xf32>
    %43 = vector.broadcast %42 : vector<1x256xf32> to vector<4x256xf32>
    %44 = arith.mulf %40, %43 : vector<4x256xf32>
    %c3_37 = arith.constant 3 : index
    %c0_38 = arith.constant 0 : index
    %c0_39 = arith.constant 0 : index
    %45 = vector.load %arg4[%c3_37, %c0_38, %c0_39] : memref<9x9x4xf32, #tpu.memory_space<vmem>>, vector<1x9x4xf32>
    %46 = vector.shape_cast %45 : vector<1x9x4xf32> to vector<9x4xf32>
    %cst_40 = arith.constant dense<0.000000e+00> : vector<9x256xf32>
    %47 = tpu.matmul %46, %44, %cst_40 {dimension_numbers = #tpu.dot_dimension_numbers<[1], [0], [0], [1], [0, 0, 1, 1], [], []>} : vector<9x4xf32>, vector<4x256xf32>, vector<9x256xf32> -> vector<9x256xf32>
    %48 = arith.addf %39, %47 : vector<9x256xf32>
    %c0_41 = arith.constant 0 : index
    %c128_42 = arith.constant 128 : index
    %49 = vector.load %arg12[%c0_41, %c128_42] : memref<4x512xf32, #tpu.memory_space<vmem>>, vector<4x256xf32>
    %c4 = arith.constant 4 : index
    %c0_43 = arith.constant 0 : index
    %c0_44 = arith.constant 0 : index
    %50 = vector.load %arg6[%c4, %c0_43, %c0_44] : memref<9x1x256xf32, #tpu.memory_space<vmem>>, vector<1x1x256xf32>
    %51 = vector.shape_cast %50 : vector<1x1x256xf32> to vector<1x256xf32>
    %52 = vector.broadcast %51 : vector<1x256xf32> to vector<4x256xf32>
    %53 = arith.mulf %49, %52 : vector<4x256xf32>
    %c4_45 = arith.constant 4 : index
    %c0_46 = arith.constant 0 : index
    %c0_47 = arith.constant 0 : index
    %54 = vector.load %arg4[%c4_45, %c0_46, %c0_47] : memref<9x9x4xf32, #tpu.memory_space<vmem>>, vector<1x9x4xf32>
    %55 = vector.shape_cast %54 : vector<1x9x4xf32> to vector<9x4xf32>
    %cst_48 = arith.constant dense<0.000000e+00> : vector<9x256xf32>
    %56 = tpu.matmul %55, %53, %cst_48 {dimension_numbers = #tpu.dot_dimension_numbers<[1], [0], [0], [1], [0, 0, 1, 1], [], []>} : vector<9x4xf32>, vector<4x256xf32>, vector<9x256xf32> -> vector<9x256xf32>
    %57 = arith.addf %48, %56 : vector<9x256xf32>
    %c0_49 = arith.constant 0 : index
    %c129 = arith.constant 129 : index
    %58 = vector.load %arg12[%c0_49, %c129] : memref<4x512xf32, #tpu.memory_space<vmem>>, vector<4x256xf32>
    %c5 = arith.constant 5 : index
    %c0_50 = arith.constant 0 : index
    %c0_51 = arith.constant 0 : index
    %59 = vector.load %arg6[%c5, %c0_50, %c0_51] : memref<9x1x256xf32, #tpu.memory_space<vmem>>, vector<1x1x256xf32>
    %60 = vector.shape_cast %59 : vector<1x1x256xf32> to vector<1x256xf32>
    %61 = vector.broadcast %60 : vector<1x256xf32> to vector<4x256xf32>
    %62 = arith.mulf %58, %61 : vector<4x256xf32>
    %c5_52 = arith.constant 5 : index
    %c0_53 = arith.constant 0 : index
    %c0_54 = arith.constant 0 : index
    %63 = vector.load %arg4[%c5_52, %c0_53, %c0_54] : memref<9x9x4xf32, #tpu.memory_space<vmem>>, vector<1x9x4xf32>
    %64 = vector.shape_cast %63 : vector<1x9x4xf32> to vector<9x4xf32>
    %cst_55 = arith.constant dense<0.000000e+00> : vector<9x256xf32>
    %65 = tpu.matmul %64, %62, %cst_55 {dimension_numbers = #tpu.dot_dimension_numbers<[1], [0], [0], [1], [0, 0, 1, 1], [], []>} : vector<9x4xf32>, vector<4x256xf32>, vector<9x256xf32> -> vector<9x256xf32>
    %66 = arith.addf %57, %65 : vector<9x256xf32>
    %c0_56 = arith.constant 0 : index
    %c135 = arith.constant 135 : index
    %67 = vector.load %arg12[%c0_56, %c135] : memref<4x512xf32, #tpu.memory_space<vmem>>, vector<4x256xf32>
    %c6 = arith.constant 6 : index
    %c0_57 = arith.constant 0 : index
    %c0_58 = arith.constant 0 : index
    %68 = vector.load %arg6[%c6, %c0_57, %c0_58] : memref<9x1x256xf32, #tpu.memory_space<vmem>>, vector<1x1x256xf32>
    %69 = vector.shape_cast %68 : vector<1x1x256xf32> to vector<1x256xf32>
    %70 = vector.broadcast %69 : vector<1x256xf32> to vector<4x256xf32>
    %71 = arith.mulf %67, %70 : vector<4x256xf32>
    %c6_59 = arith.constant 6 : index
    %c0_60 = arith.constant 0 : index
    %c0_61 = arith.constant 0 : index
    %72 = vector.load %arg4[%c6_59, %c0_60, %c0_61] : memref<9x9x4xf32, #tpu.memory_space<vmem>>, vector<1x9x4xf32>
    %73 = vector.shape_cast %72 : vector<1x9x4xf32> to vector<9x4xf32>
    %cst_62 = arith.constant dense<0.000000e+00> : vector<9x256xf32>
    %74 = tpu.matmul %73, %71, %cst_62 {dimension_numbers = #tpu.dot_dimension_numbers<[1], [0], [0], [1], [0, 0, 1, 1], [], []>} : vector<9x4xf32>, vector<4x256xf32>, vector<9x256xf32> -> vector<9x256xf32>
    %75 = arith.addf %66, %74 : vector<9x256xf32>
    %c0_63 = arith.constant 0 : index
    %c136 = arith.constant 136 : index
    %76 = vector.load %arg12[%c0_63, %c136] : memref<4x512xf32, #tpu.memory_space<vmem>>, vector<4x256xf32>
    %c7 = arith.constant 7 : index
    %c0_64 = arith.constant 0 : index
    %c0_65 = arith.constant 0 : index
    %77 = vector.load %arg6[%c7, %c0_64, %c0_65] : memref<9x1x256xf32, #tpu.memory_space<vmem>>, vector<1x1x256xf32>
    %78 = vector.shape_cast %77 : vector<1x1x256xf32> to vector<1x256xf32>
    %79 = vector.broadcast %78 : vector<1x256xf32> to vector<4x256xf32>
    %80 = arith.mulf %76, %79 : vector<4x256xf32>
    %c7_66 = arith.constant 7 : index
    %c0_67 = arith.constant 0 : index
    %c0_68 = arith.constant 0 : index
    %81 = vector.load %arg4[%c7_66, %c0_67, %c0_68] : memref<9x9x4xf32, #tpu.memory_space<vmem>>, vector<1x9x4xf32>
    %82 = vector.shape_cast %81 : vector<1x9x4xf32> to vector<9x4xf32>
    %cst_69 = arith.constant dense<0.000000e+00> : vector<9x256xf32>
    %83 = tpu.matmul %82, %80, %cst_69 {dimension_numbers = #tpu.dot_dimension_numbers<[1], [0], [0], [1], [0, 0, 1, 1], [], []>} : vector<9x4xf32>, vector<4x256xf32>, vector<9x256xf32> -> vector<9x256xf32>
    %84 = arith.addf %75, %83 : vector<9x256xf32>
    %c0_70 = arith.constant 0 : index
    %c137 = arith.constant 137 : index
    %85 = vector.load %arg12[%c0_70, %c137] : memref<4x512xf32, #tpu.memory_space<vmem>>, vector<4x256xf32>
    %c8 = arith.constant 8 : index
    %c0_71 = arith.constant 0 : index
    %c0_72 = arith.constant 0 : index
    %86 = vector.load %arg6[%c8, %c0_71, %c0_72] : memref<9x1x256xf32, #tpu.memory_space<vmem>>, vector<1x1x256xf32>
    %87 = vector.shape_cast %86 : vector<1x1x256xf32> to vector<1x256xf32>
    %88 = vector.broadcast %87 : vector<1x256xf32> to vector<4x256xf32>
    %89 = arith.mulf %85, %88 : vector<4x256xf32>
    %c8_73 = arith.constant 8 : index
    %c0_74 = arith.constant 0 : index
    %c0_75 = arith.constant 0 : index
    %90 = vector.load %arg4[%c8_73, %c0_74, %c0_75] : memref<9x9x4xf32, #tpu.memory_space<vmem>>, vector<1x9x4xf32>
    %91 = vector.shape_cast %90 : vector<1x9x4xf32> to vector<9x4xf32>
    %cst_76 = arith.constant dense<0.000000e+00> : vector<9x256xf32>
    %92 = tpu.matmul %91, %89, %cst_76 {dimension_numbers = #tpu.dot_dimension_numbers<[1], [0], [0], [1], [0, 0, 1, 1], [], []>} : vector<9x4xf32>, vector<4x256xf32>, vector<9x256xf32> -> vector<9x256xf32>
    %93 = arith.addf %84, %92 : vector<9x256xf32>
    %c0_77 = arith.constant 0 : index
    %c0_78 = arith.constant 0 : index
    %94 = vector.load %arg5[%c0_77, %c0_78] : memref<9x1xf32, #tpu.memory_space<vmem>>, vector<9x1xf32>
    %95 = vector.broadcast %94 : vector<9x1xf32> to vector<9x256xf32>
    %96 = arith.addf %93, %95 : vector<9x256xf32>
    %cst_79 = arith.constant 0.000000e+00 : f32
    %97 = vector.broadcast %cst_79 : f32 to vector<9x256xf32>
    %98 = arith.maximumf %96, %97 : vector<9x256xf32>
    %cst_80 = arith.constant 0.000000e+00 : f32
    %99 = vector.broadcast %cst_80 : f32 to vector<9x512xf32>
    %c0_81 = arith.constant 0 : index
    %c0_82 = arith.constant 0 : index
    %100 = vector.load %arg13[%c0_81, %c0_82] : memref<9x512xf32, #tpu.memory_space<vmem>>, vector<9x512xf32>
    tpu.vector_store %arg13[%c0_81, %c0_82], %99 {strides = array<i32>} : memref<9x512xf32, #tpu.memory_space<vmem>>, vector<9x512xf32>,
    %c0_83 = arith.constant 0 : index
    %c128_84 = arith.constant 128 : index
    %101 = vector.load %arg13[%c0_83, %c128_84] : memref<9x512xf32, #tpu.memory_space<vmem>>, vector<9x256xf32>
    tpu.vector_store %arg13[%c0_83, %c128_84], %98 {strides = array<i32>} : memref<9x512xf32, #tpu.memory_space<vmem>>, vector<9x256xf32>,
    %cst_85 = arith.constant 0.000000e+00 : f32
    %102 = vector.broadcast %cst_85 : f32 to vector<4x256xf32>
    %c0_86 = arith.constant 0 : index
    %c64 = arith.constant 64 : index
    %103 = vector.load %arg13[%c0_86, %c64] : memref<9x512xf32, #tpu.memory_space<vmem>>, vector<9x256xf32>
    %c0_87 = arith.constant 0 : index
    %c0_88 = arith.constant 0 : index
    %c0_89 = arith.constant 0 : index
    %104 = vector.load %arg7[%c0_87, %c0_88, %c0_89] : memref<3x4x9xf32, #tpu.memory_space<vmem>>, vector<1x4x9xf32>
    %105 = vector.shape_cast %104 : vector<1x4x9xf32> to vector<4x9xf32>
    %cst_90 = arith.constant dense<0.000000e+00> : vector<4x256xf32>
    %106 = tpu.matmul %105, %103, %cst_90 {dimension_numbers = #tpu.dot_dimension_numbers<[1], [0], [0], [1], [0, 0, 1, 1], [], []>} : vector<4x9xf32>, vector<9x256xf32>, vector<4x256xf32> -> vector<4x256xf32>
    %107 = arith.addf %102, %106 : vector<4x256xf32>
    %c0_91 = arith.constant 0 : index
    %c128_92 = arith.constant 128 : index
    %108 = vector.load %arg13[%c0_91, %c128_92] : memref<9x512xf32, #tpu.memory_space<vmem>>, vector<9x256xf32>
    %c1_93 = arith.constant 1 : index
    %c0_94 = arith.constant 0 : index
    %c0_95 = arith.constant 0 : index
    %109 = vector.load %arg7[%c1_93, %c0_94, %c0_95] : memref<3x4x9xf32, #tpu.memory_space<vmem>>, vector<1x4x9xf32>
    %110 = vector.shape_cast %109 : vector<1x4x9xf32> to vector<4x9xf32>
    %cst_96 = arith.constant dense<0.000000e+00> : vector<4x256xf32>
    %111 = tpu.matmul %110, %108, %cst_96 {dimension_numbers = #tpu.dot_dimension_numbers<[1], [0], [0], [1], [0, 0, 1, 1], [], []>} : vector<4x9xf32>, vector<9x256xf32>, vector<4x256xf32> -> vector<4x256xf32>
    %112 = arith.addf %107, %111 : vector<4x256xf32>
    %c0_97 = arith.constant 0 : index
    %c192 = arith.constant 192 : index
    %113 = vector.load %arg13[%c0_97, %c192] : memref<9x512xf32, #tpu.memory_space<vmem>>, vector<9x256xf32>
    %c2_98 = arith.constant 2 : index
    %c0_99 = arith.constant 0 : index
    %c0_100 = arith.constant 0 : index
    %114 = vector.load %arg7[%c2_98, %c0_99, %c0_100] : memref<3x4x9xf32, #tpu.memory_space<vmem>>, vector<1x4x9xf32>
    %115 = vector.shape_cast %114 : vector<1x4x9xf32> to vector<4x9xf32>
    %cst_101 = arith.constant dense<0.000000e+00> : vector<4x256xf32>
    %116 = tpu.matmul %115, %113, %cst_101 {dimension_numbers = #tpu.dot_dimension_numbers<[1], [0], [0], [1], [0, 0, 1, 1], [], []>} : vector<4x9xf32>, vector<9x256xf32>, vector<4x256xf32> -> vector<4x256xf32>
    %117 = arith.addf %112, %116 : vector<4x256xf32>
    %c0_102 = arith.constant 0 : index
    %c0_103 = arith.constant 0 : index
    %118 = vector.load %arg8[%c0_102, %c0_103] : memref<4x1xf32, #tpu.memory_space<vmem>>, vector<4x1xf32>
    %119 = vector.broadcast %118 : vector<4x1xf32> to vector<4x256xf32>
    %120 = arith.addf %117, %119 : vector<4x256xf32>
    %cst_104 = arith.constant 0.000000e+00 : f32
    %121 = vector.broadcast %cst_104 : f32 to vector<4x256xf32>
    %122 = arith.maximumf %120, %121 : vector<4x256xf32>
    %c0_105 = arith.constant 0 : index
    %c0_106 = arith.constant 0 : index
    %123 = vector.load %arg9[%c0_105, %c0_106] : memref<16x4xf32, #tpu.memory_space<vmem>>, vector<16x4xf32>
    %cst_107 = arith.constant dense<0.000000e+00> : vector<16x256xf32>
    %124 = tpu.matmul %123, %122, %cst_107 {dimension_numbers = #tpu.dot_dimension_numbers<[1], [0], [0], [1], [0, 0, 1, 1], [], []>} : vector<16x4xf32>, vector<4x256xf32>, vector<16x256xf32> -> vector<16x256xf32>
    %c0_108 = arith.constant 0 : index
    %c0_109 = arith.constant 0 : index
    %125 = vector.load %arg10[%c0_108, %c0_109] : memref<16x1xf32, #tpu.memory_space<vmem>>, vector<16x1xf32>
    %126 = vector.broadcast %125 : vector<16x1xf32> to vector<16x256xf32>
    %127 = arith.addf %124, %126 : vector<16x256xf32>
    %128 = arith.addf %127, %1 : vector<16x256xf32>
    %cst_110 = arith.constant 0.000000e+00 : f32
    %129 = vector.broadcast %cst_110 : f32 to vector<16x256xf32>
    %130 = arith.maximumf %128, %129 : vector<16x256xf32>
    %c0_111 = arith.constant 0 : index
    %c0_112 = arith.constant 0 : index
    %c0_113 = arith.constant 0 : index
    %131 = vector.load %arg11[%c0_111, %c0_112, %c0_113] : memref<1x16x256xf32, #tpu.memory_space<vmem>>, vector<1x16x256xf32>
    %132 = vector.shape_cast %131 : vector<1x16x256xf32> to vector<16x256xf32>
    %133 = vector.shape_cast %130 : vector<16x256xf32> to vector<1x16x256xf32>
    tpu.vector_store %arg11[%c0_111, %c0_112, %c0_113], %133 {strides = array<i32>} : memref<1x16x256xf32, #tpu.memory_space<vmem>>, vector<1x16x256xf32>,
    return
  }
  func.func @transform_0(%arg0: i32) -> (i32, i32, i32) {
    %c0_i32 = arith.constant 0 : i32
    %c0_i32_0 = arith.constant 0 : i32
    %c0_i32_1 = arith.constant 0 : i32
    return %arg0, %c0_i32, %c0_i32_0 : i32, i32, i32
  }
  func.func @transform_1(%arg0: i32) -> (i32, i32) {
    %c0_i32 = arith.constant 0 : i32
    %c0_i32_0 = arith.constant 0 : i32
    %c0_i32_1 = arith.constant 0 : i32
    return %c0_i32, %c0_i32_0 : i32, i32
  }
  func.func @transform_2(%arg0: i32) -> (i32, i32) {
    %c0_i32 = arith.constant 0 : i32
    %c0_i32_0 = arith.constant 0 : i32
    %c0_i32_1 = arith.constant 0 : i32
    return %c0_i32, %c0_i32_0 : i32, i32
  }
  func.func @transform_3(%arg0: i32) -> (i32, i32, i32) {
    %c0_i32 = arith.constant 0 : i32
    %c0_i32_0 = arith.constant 0 : i32
    %c0_i32_1 = arith.constant 0 : i32
    %c0_i32_2 = arith.constant 0 : i32
    return %c0_i32, %c0_i32_0, %c0_i32_1 : i32, i32, i32
  }
  func.func @transform_4(%arg0: i32) -> (i32, i32) {
    %c0_i32 = arith.constant 0 : i32
    %c0_i32_0 = arith.constant 0 : i32
    %c0_i32_1 = arith.constant 0 : i32
    return %c0_i32, %c0_i32_0 : i32, i32
  }
  func.func @transform_5(%arg0: i32) -> (i32, i32, i32) {
    %c0_i32 = arith.constant 0 : i32
    %c0_i32_0 = arith.constant 0 : i32
    %c0_i32_1 = arith.constant 0 : i32
    %c0_i32_2 = arith.constant 0 : i32
    return %c0_i32, %c0_i32_0, %c0_i32_1 : i32, i32, i32
  }
  func.func @transform_6(%arg0: i32) -> (i32, i32, i32) {
    %c0_i32 = arith.constant 0 : i32
    %c0_i32_0 = arith.constant 0 : i32
    %c0_i32_1 = arith.constant 0 : i32
    %c0_i32_2 = arith.constant 0 : i32
    return %c0_i32, %c0_i32_0, %c0_i32_1 : i32, i32, i32
  }
  func.func @transform_7(%arg0: i32) -> (i32, i32) {
    %c0_i32 = arith.constant 0 : i32
    %c0_i32_0 = arith.constant 0 : i32
    %c0_i32_1 = arith.constant 0 : i32
    return %c0_i32, %c0_i32_0 : i32, i32
  }
  func.func @transform_8(%arg0: i32) -> (i32, i32) {
    %c0_i32 = arith.constant 0 : i32
    %c0_i32_0 = arith.constant 0 : i32
    %c0_i32_1 = arith.constant 0 : i32
    return %c0_i32, %c0_i32_0 : i32, i32
  }
  func.func @transform_9(%arg0: i32) -> (i32, i32) {
    %c0_i32 = arith.constant 0 : i32
    %c0_i32_0 = arith.constant 0 : i32
    %c0_i32_1 = arith.constant 0 : i32
    return %c0_i32, %c0_i32_0 : i32, i32
  }
  func.func @transform_10(%arg0: i32) -> (i32, i32, i32) {
    %c0_i32 = arith.constant 0 : i32
    %c0_i32_0 = arith.constant 0 : i32
    %c0_i32_1 = arith.constant 0 : i32
    return %arg0, %c0_i32, %c0_i32_0 : i32, i32, i32
  }
}

</mosaic_0001>

<bundles_post_ra>
// kernel: bottleneck_pallas.1
= control target key start
LH: loop header
LB: loop body
LE: loop exit
PB: predicated region body
PF: predicated region fallthrough
CT: control target
= control target key end

     0   :  { %s2291_s13 = smov 0   ;;  %s2634_s0 = inlined_call_operand.vmem [shape: f32[2,16,256], index: 0, kind: input, shape index: {}]   ;;  %s2635_s1 = inlined_call_operand.vmem [shape: f32[4,16], index: 1, kind: input, shape index: {}]   ;;  %s2636_s2 = inlined_call_operand.vmem [shape: f32[4,1], index: 2, kind: input, shape index: {}]   ;;  %s2637_s3 = inlined_call_operand.vmem [shape: f32[9,9,4], index: 3, kind: input, shape index: {}]   ;;  %s2638_s4 = inlined_call_operand.vmem [shape: f32[9,1], index: 4, kind: input, shape index: {}]   ;;  %s2639_s5 = inlined_call_operand.vmem [shape: f32[9,1,256], index: 5, kind: input, shape index: {}]   ;;  %s2640_s6 = inlined_call_operand.vmem [shape: f32[3,4,9], index: 6, kind: input, shape index: {}]   ;;  %s2641_s7 = inlined_call_operand.vmem [shape: f32[4,1], index: 7, kind: input, shape index: {}]   ;;  %s2642_s8 = inlined_call_operand.vmem [shape: f32[16,4], index: 8, kind: input, shape index: {}]   ;;  %s2643_s9 = inlined_call_operand.vmem [shape: f32[16,1], index: 9, kind: input, shape index: {}]   ;;  %s2644_s10 = inlined_call_operand.vmem [shape: f32[2,16,256], index: 10, kind: output, shape index: {}]  }
   0x1 LB: > { %s2095_s14 = sadd.s32 4294967295, %s2223_s13   ;;  %p2099_p0 = scmp.ge.s32.totalorder %s2223_s13, 1  ;;  %s2223_s13 = sphi %s2291_s13, %s20_s13  }
   0x2   : > { %p312_p1 = scmp.lt.s32.totalorder %s2223_s13, 3 }
   0x4   : > { %p313_p2 = pnand %p2099_p0, %p312_p1 }
   0x5   : > { %p350_p3 = scmp.lt.s32.totalorder (!%p313_p2), %s2095_s14, 1  ;;  %s2227_s17 = smov (!%p313_p2), 119  }
   0x6   : > { %316 = sbr.rel (%p313_p2) target bundleno = 1143 (0x477), region = 60  ;;  %s2228_s18 = smov (!%p313_p2), 120  }
   0x7   : > { %s2229_s24 = smov (!%p313_p2), 121   ;;  %s2230_s25 = smov (!%p313_p2), 127  }
   0x8   : > { %s2231_s26 = smov (!%p313_p2), 1   ;;  %s2232_s27 = smov (!%p313_p2), 7  }
   0x9   : > { %s2234_s29 = smov (!%p313_p2), 9   ;;  %s2235_s20 = smov (!%p313_p2), 64  }
   0xb   : > { %v459_v0 = vlaneseq  ;;  %v2225_v1 = vmov 0.0   ;;  %v2226_v2 = vmov 0   ;;  %v365_v3 = vld [vmem:[%s2636_s2] sm:$0xf]  ;;  %s2646_s14 = smov (!%p350_p3, %s2095_s14), 1  ;;  %vm371_vm0 = vcmask 130048  }
   0xc   : > { %439 = vmatprep.mubr.f32.mxu0 %v2225_v1  ;;  %448 = vst [vmem:[#allocation2] sm:$0xff] %v2225_v1  ;;  %449 = vst [vmem:[#allocation2 + $0x8] sm:$0xff] %v2225_v1  ;;  %2205 = vset.pattern.permute.xlu0 %v2226_v2  ;;  %v457_v5 = vld [vmem:[%s2639_s5] sm:$0x3]  ;;  %v2105_v6 = vld [vmem:[%s2639_s5 + $0x2] sm:$0x3] }
   0xd   : > { %1604 = vst [vmem:[#allocation3 + $0x8] sm:$0x1] %v2225_v1  ;;  %1605 = vst [vmem:[#allocation3 + $0x20] sm:$0x1] %v2225_v1  ;;  %368 = vperm.xlu0 %2205, %v365_v3   ;;  %v460_v4 = vshrl.u32 %v459_v0, 7  ;;  %597 = vmatprep.mubr.f32.mxu1 %v2225_v1  ;;  %s2182_s23 = sshll.u32 %s2646_s14, 5 }
   0xe   : > { %1606 = vst [vmem:[#allocation3 + $0x28] sm:$0x1] %v2225_v1  ;;  %1607 = vst [vmem:[#allocation3 + $0x38] sm:$0x1] %v2225_v1  ;;  %v2116_v7 = vld [vmem:[%s2639_s5 + $0x4] sm:$0x3]  ;;  %2206 = vset.pattern.permute.xlu1 %v2226_v2  ;;  %s354_s28 = scalar_lea.vmem %s2634_s0, %s2182_s23  ;;  %s359_s22 = scalar_lea.vmem %s2644_s10, %s2182_s23 }
   0xf   : > { %v2322_v8 = vsub.s32 0, %v460_v4  ;;  %v2324_v9 = vsub.s32 1, %v460_v4  ;;  %v2123_v10 = vld [vmem:[%s2639_s5 + $0x6] sm:$0x3]  ;;  %v2334_v11 = vld [vmem:[%s354_s28 + $0x18] sm:$0xff]  ;;  %v2336_v12 = vld [vmem:[%s354_s28 + $0x10] sm:$0xff] }
  0x10   : > { %v2338_v13 = vld [vmem:[%s354_s28 + $0x8] sm:$0xff]  ;;  %403 = vmatprep.subr.mxu0 %v2334_v11  ;;  %v2345_v18 = vld [vmem:[%s354_s28] sm:$0xff]  ;;  %v2158_v35 = vld [vmem:[%s2639_s5 + $0x10] sm:$0x3]  ;;  %s2233_s28 = smov 8   ;;  %vm494_vm1 = vcmask 982016  }
  0x11   : > { %v462_v14 = vrot.slane %v457_v5, %v2322_v8  ;;  %v466_v15 = vrot.slane %v457_v5, %v2324_v9  ;;  %v485_v16 = vrot.slane %v2105_v6, %v2322_v8  ;;  %v489_v17 = vrot.slane %v2105_v6, %v2324_v9  ;;  %v2137_v23 = vld [vmem:[%s2639_s5 + $0xa] sm:$0x3]  ;;  %404 = vmatpush1.msra.mxu0 %v2336_v12  ;;  %v364_v24 = vld [vmem:[%s2635_s1] sm:$0xf]  ;;  %v2144_v27 = vld [vmem:[%s2639_s5 + $0xc] sm:$0x3] }
  0x12   : > { %v711_v19 = vrot.slane %v2116_v7, %v2322_v8  ;;  %v715_v20 = vrot.slane %v2116_v7, %v2324_v9  ;;  %v840_v21 = vrot.slane %v2123_v10, %v2322_v8  ;;  %v844_v22 = vrot.slane %v2123_v10, %v2324_v9  ;;  %405 = vmatprep.subr.mxu0 %v2338_v13  ;;  %v2151_v34 = vld [vmem:[%s2639_s5 + $0xe] sm:$0x3] }
  0x13   : > { %v467_v25 = vcombine.low %v462_v14, %v466_v15  ;;  %v490_v26 = vcombine.low %v485_v16, %v489_v17  ;;  %406 = vmatpush1.msra.mxu0 %v2345_v18  ;;  %v1080_v29 = vrot.slane %v2137_v23, %v2322_v8  ;;  %v1084_v30 = vrot.slane %v2137_v23, %v2324_v9 }
  0x14   : > { %v716_v28 = vcombine.low %v711_v19, %v715_v20  ;;  %2104 = vmatmul.mubr.msk.f32.vlgmr.msra.gmra.mxu0 %vm371_vm0, %v364_v24  ;;  %v845_v31 = vcombine.low %v840_v21, %v844_v22  ;;  %v1207_v32 = vrot.slane %v2144_v27, %v2322_v8  ;;  %v1211_v33 = vrot.slane %v2144_v27, %v2324_v9  ;;  %v1073_v20 = vld [vmem:[#allocation2 + $0xc] sm:$0xf] }
  0x15   : > { %468 = vrot.lane.b32.xlu1 %v467_v25, %s2227_s17  ;;  %491 = vrot.lane.b32.xlu0 %v490_v26, %s2228_s18  ;;  %v1085_v36 = vcombine.low %v1080_v29, %v1084_v30  ;;  %v1334_v37 = vrot.slane %v2151_v34, %v2322_v8  ;;  %v1338_v38 = vrot.slane %v2151_v34, %v2324_v9  ;;  %vm471_vm2 = vcmask 973824   ;;  %v1200_v29 = vld [vmem:[#allocation2 + $0xc] sm:$0xf] }
  0x16   : > { %591 = vmatprep.mubr.f32.mxu0 %v2225_v1  ;;  %v1212_v39 = vcombine.low %v1207_v32, %v1211_v33  ;;  %v1461_v40 = vrot.slane %v2158_v35, %v2322_v8  ;;  %v1465_v41 = vrot.slane %v2158_v35, %v2324_v9  ;;  %vm720_vm3 = vcmask 990208  }
  0x17   : > { %v1339_v42 = vcombine.low %v1334_v37, %v1338_v38  ;;  %vm849_vm4 = vcmask 1039360   ;;  %vm867_vm5 = vcmask 7168   ;;  %vm738_vm6 = vcmask 56320  }
  0x18   : > { %v1466_v43 = vcombine.low %v1461_v40, %v1465_v41  ;;  %vm512_vm7 = vcmask 64512   ;;  %vm613_vm8 = vcmask 72704   ;;  %vm522_vm9 = vcmask 1043456  }
  0x19   : > { %717 = vrot.lane.b32.xlu1 %v716_v28, %s2229_s24  ;;  %846 = vrot.lane.b32.xlu0 %v845_v31, %s2230_s25  ;;  %vm515_vm10 = vcmask 31744   ;;  %vm1624_vm11 = vcmask 1040384   ;;  %vm1718_vm12 = vcmask 523264  }
  0x1d   : > { %1086 = vrot.lane.b32.xlu1 %v1085_v36, %s2231_s26  ;;  %1213 = vrot.lane.b32.xlu0 %v1212_v39, %s2232_s27  ;;  %v1327_v39 = vld [vmem:[#allocation2 + $0xc] sm:$0xf] }
  0x21   : > { %1340 = vrot.lane.b32.xlu1 %v1339_v42, %s2233_s28  ;;  %1467 = vrot.lane.b32.xlu0 %v1466_v43, %s2234_s29 }
  0x87   : > { %v469_v52 = vpop.permute.xlu1 %468 }
  0x88   : > { %v369_v44 = vpop.permute.xlu0 %368  ;;  %v470_v55 = vrot.slane %v469_v52, 4 }
  0x8a   : > { %v472_v62 = vsel %vm471_vm2, %v470_v55, %v469_v52  ;;  %v1580_v52 = vld [vmem:[%s2638_s4] sm:$0xff] }
  0x8b   : > { %v718_v59 = vpop.permute.xlu1 %717 }
  0x8c   : > { %v492_v53 = vpop.permute.xlu0 %491  ;;  %v719_v63 = vrot.slane %v718_v59, 4 }
  0x8d   : > { %v493_v54 = vrot.slane %v492_v53, 4 }
  0x8e   : > { %v721_v5 = vsel %vm720_vm3, %v719_v63, %v718_v59 }
  0x8f   : > { %v495_v57 = vsel %vm494_vm1, %v493_v54, %v492_v53  ;;  %v1087_v19 = vpop.permute.xlu1 %1086  ;;  %v1581_v53 = vld [vmem:[%s2638_s4 + $0x8] sm:$0x1] }
  0x90   : > { %v847_v0 = vpop.permute.xlu0 %846  ;;  %v1088_v22 = vrot.slane %v1087_v19, 4 }
  0x91   : > { %v848_v6 = vrot.slane %v847_v0, 4 }
  0x92   : > { %v1093_v24 = vmul.f32 %v1088_v22, %v1073_v20  ;;  %v1089_v27 = vsel %vm867_vm5, %v1088_v22, %v1087_v19  ;;  %v2117_v22 = vld [vmem:[%s2637_s3 + $0x20] sm:$0xff] }
  0x93   : > { %v850_v14 = vsel %vm849_vm4, %v848_v6, %v847_v0  ;;  %v1341_v34 = vpop.permute.xlu1 %1340 }
  0x94   : > { %v1214_v25 = vpop.permute.xlu0 %1213  ;;  %v1342_v37 = vrot.slane %v1341_v34, 4 }
  0x95   : > { %v1215_v28 = vrot.slane %v1214_v25, 4 }
  0x96   : > { %v1343_v42 = vsel %vm512_vm7, %v1342_v37, %v1341_v34 }
  0x97   : > { %v1216_v32 = vsel %vm738_vm6, %v1215_v28, %v1214_v25  ;;  %v1220_v33 = vmul.f32 %v1215_v28, %v1200_v29  ;;  %v2124_v28 = vld [vmem:[%s2637_s3 + $0x30] sm:$0xff] }
  0x98   : > { %v1468_v35 = vpop.permute.xlu0 %1467 }
  0x99   : > { %v1469_v38 = vrot.slane %v1468_v35, 4 }
  0x9b   : > { %v1470_v43 = vsel %vm613_vm8, %v1469_v38, %v1468_v35 }
  0xd4   : > { %v441_v45 = vpop.f32.mrf.mxu0 }
  0xd5   : > { %v442_v46 = vadd.f32 %v441_v45, %v369_v44 }
  0xd6   : > { %v443_v47 = vpop.f32.mrf.mxu0 }
  0xd7   : > { %v444_v48 = vadd.f32 %v443_v47, %v369_v44  ;;  %v446_v49 = vmax.f32 %v442_v46, 0.0  ;;  %v1347_v44 = vmul.f32 %v1342_v37, %v1327_v39  ;;  %v2138_v39 = vld [vmem:[%s2637_s3 + $0x50] sm:$0xff] }
  0xd9   : > { %v447_v50 = vmax.f32 %v444_v48, 0.0 }
  0xdb   : > { %v2386_v51 = vcombine.low %v446_v49, %v447_v50  ;;  %v1454_v49 = vld [vmem:[#allocation2 + $0xc] sm:$0xf] }
  0xdc   : > { %v1474_v50 = vmul.f32 %v1469_v38, %v1454_v49  ;;  %v2152_v49 = vld [vmem:[%s2637_s3 + $0x70] sm:$0xff] }
  0xdd   : > { %454 = vst [vmem:[#allocation2 + $0x4] sm:$0xff] %v2386_v51  ;;  %v1092_v30 = vmul.f32 %v1089_v27, %v2386_v51  ;;  %v1219_v36 = vmul.f32 %v1216_v32, %v2386_v51  ;;  %v1346_v45 = vmul.f32 %v1343_v42, %v2386_v51  ;;  %v1473_v46 = vmul.f32 %v1470_v43, %v2386_v51  ;;  %v2118_v27 = vld [vmem:[%s2637_s3 + $0x28] sm:$0x1]  ;;  %v2131_v32 = vld [vmem:[%s2637_s3 + $0x40] sm:$0xff]  ;;  %v2139_v43 = vld [vmem:[%s2637_s3 + $0x58] sm:$0x1] }
  0xdf   : > { %v1099_v40 = vcombine.high %v1092_v30, %v1092_v30  ;;  %v1226_v41 = vcombine.high %v1219_v36, %v1219_v36  ;;  %v1353_v47 = vcombine.high %v1346_v45, %v1346_v45  ;;  %v1480_v48 = vcombine.high %v1473_v46, %v1473_v46 }
  0xe4   : > { %v703_v56 = vld [vmem:[#allocation2] sm:$0xff]  ;;  %v456_v58 = vld [vmem:[#allocation2 + $0x8] sm:$0xf] }
  0xe5   : > { %v499_v60 = vmul.f32 %v493_v54, %v456_v58  ;;  %v498_v61 = vmul.f32 %v703_v56, %v495_v57  ;;  %v476_v2 = vmul.f32 %v470_v55, %v456_v58  ;;  %v475_v3 = vmul.f32 %v703_v56, %v472_v62  ;;  %v704_v4 = vld [vmem:[#allocation2 + $0x8] sm:$0xf] }
  0xe6   : > { %v724_v7 = vmul.f32 %v721_v5, %v703_v56  ;;  %v725_v10 = vmul.f32 %v719_v63, %v704_v4  ;;  %v853_v15 = vmul.f32 %v850_v14, %v703_v56  ;;  %v833_v17 = vld [vmem:[#allocation2 + $0x8] sm:$0xf]  ;;  %v2106_v4 = vld [vmem:[%s2637_s3 + $0x10] sm:$0xff]  ;;  %v2107_v5 = vld [vmem:[%s2637_s3 + $0x18] sm:$0x1] }
  0xe7   : > { %510 = vrot.lane.b32.xlu0 %v499_v60, %s2233_s28  ;;  %506 = vrot.lane.b32.xlu1 %v498_v61, %s2233_s28  ;;  %v505_v16 = vcombine.high %v498_v61, %v498_v61  ;;  %v854_v21 = vmul.f32 %v848_v6, %v833_v17  ;;  %v606_v23 = vcombine.high %v475_v3, %v475_v3  ;;  %v2130_v60 = vld [vmem:[%s2639_s5 + $0x8] sm:$0x3]  ;;  %v477_v14 = vld [vmem:[%s2637_s3] sm:$0xff] }
  0xe8   : > { %v731_v26 = vcombine.high %v724_v7, %v724_v7  ;;  %v860_v31 = vcombine.high %v853_v15, %v853_v15  ;;  %v968_v61 = vrot.slane %v2130_v60, %v2322_v8  ;;  %v972_v62 = vrot.slane %v2130_v60, %v2324_v9  ;;  %v1808_v60 = vld [vmem:[#allocation3 + $0x38] sm:$0x1] }
  0xea   : > { %v973_v8 = vcombine.low %v968_v61, %v972_v62 }
  0xeb   : > { %611 = vrot.lane.b32.xlu1 %v476_v2, %s2234_s29  ;;  %607 = vrot.lane.b32.xlu0 %v475_v3, %s2234_s29 }
  0xef   : > { %732 = vrot.lane.b32.xlu1 %v724_v7, %s2232_s27  ;;  %736 = vrot.lane.b32.xlu0 %v725_v10, %s2232_s27 }
  0xf3   : > { %508 = vrot.lane.b32.xlu1 %v505_v16, %s2233_s28  ;;  %861 = vrot.lane.b32.xlu0 %v853_v15, %s2231_s26  ;;  %v975_v15 = vmul.f32 %v973_v8, %v2386_v51 }
  0xf5   : > { %v980_v51 = vcombine.high %v975_v15, %v975_v15 }
  0xf7   : > { %865 = vrot.lane.b32.xlu1 %v854_v21, %s2231_s26  ;;  %609 = vrot.lane.b32.xlu0 %v606_v23, %s2234_s29  ;;  %v478_v21 = vld [vmem:[%s2637_s3 + $0x8] sm:$0x1] }
  0xfb   : > { %734 = vrot.lane.b32.xlu1 %v731_v26, %s2232_s27  ;;  %1104 = vrot.lane.b32.xlu0 %v1093_v24, %s2230_s25 }
  0xff   : > { %1100 = vrot.lane.b32.xlu1 %v1092_v30, %s2230_s25  ;;  %863 = vrot.lane.b32.xlu0 %v860_v31, %s2231_s26  ;;  %v2125_v31 = vld [vmem:[%s2637_s3 + $0x38] sm:$0x1] }
 0x103   : > { %1231 = vrot.lane.b32.xlu1 %v1220_v33, %s2229_s24  ;;  %1227 = vrot.lane.b32.xlu0 %v1219_v36, %s2229_s24 }
 0x107   : > { %1102 = vrot.lane.b32.xlu1 %v1099_v40, %s2230_s25  ;;  %1229 = vrot.lane.b32.xlu0 %v1226_v41, %s2229_s24  ;;  %v2132_v40 = vld [vmem:[%s2637_s3 + $0x48] sm:$0x1] }
 0x10b   : > { %1354 = vrot.lane.b32.xlu1 %v1346_v45, %s2228_s18  ;;  %1358 = vrot.lane.b32.xlu0 %v1347_v44, %s2228_s18  ;;  %v2145_v44 = vld [vmem:[%s2637_s3 + $0x60] sm:$0xff] }
 0x10f   : > { %1356 = vrot.lane.b32.xlu1 %v1353_v47, %s2228_s18  ;;  %1483 = vrot.lane.b32.xlu0 %v1480_v48, %s2227_s17 }
 0x113   : > { %1485 = vrot.lane.b32.xlu1 %v1474_v50, %s2227_s17  ;;  %1481 = vrot.lane.b32.xlu0 %v1473_v46, %s2227_s17  ;;  %v2146_v50 = vld [vmem:[%s2637_s3 + $0x68] sm:$0x1] }
 0x117   : > { %1584 = vperm.xlu0 %2205, %v1580_v52   ;;  %1589 = vperm.xlu1 %2206, %v1581_v53  }
 0x159   : > { %v511_v54 = vpop.permute.xlu0 %510  ;;  %v507_v55 = vpop.permute.xlu1 %506 }
 0x15d   : > { %v612_v56 = vpop.permute.xlu1 %611  ;;  %v608_v57 = vpop.permute.xlu0 %607 }
 0x161   : > { %v733_v58 = vpop.permute.xlu1 %732  ;;  %v737_v59 = vpop.permute.xlu0 %736 }
 0x165   : > { %v509_v63 = vpop.permute.xlu1 %508  ;;  %v862_v0 = vpop.permute.xlu0 %861 }
 0x166   : > { %v513_v2 = vsel %vm512_vm7, %v507_v55, %v509_v63  ;;  %v514_v3 = vsel %vm512_vm7, %v509_v63, %v511_v54 }
 0x167   : > { %2108 = vmatprep.subr.msk.mxu0 %vm522_vm9, %v514_v3  ;;  %2184 = vmatprep.subr.msk.mxu1 %vm522_vm9, %v514_v3 }
 0x168   : > { %2109 = vmatpush1.msk.msra.mxu0 %vm522_vm9, %v513_v2  ;;  %2185 = vmatpush1.msk.msra.mxu1 %vm522_vm9, %v513_v2 }
 0x169   : > { %2110 = vmatmul.mubr.msk.f32.vlgmr.msra.gmra.mxu0 %vm515_vm10, %v2106_v4  ;;  %v866_v9 = vpop.permute.xlu1 %865  ;;  %v610_v6 = vpop.permute.xlu0 %609  ;;  %2111 = vmatmul.mubr.msk.f32.vlgmr.msra.gmra.mxu1 %vm515_vm10, %v2107_v5 }
 0x16a   : > { %v614_v7 = vsel %vm613_vm8, %v608_v57, %v610_v6  ;;  %v615_v10 = vsel %vm613_vm8, %v610_v6, %v612_v56  ;;  %690 = vmatprep.mubr.f32.mxu0 %v2225_v1  ;;  %815 = vmatprep.mubr.f32.mxu1 %v2225_v1  ;;  %v2153_v56 = vld [vmem:[%s2637_s3 + $0x78] sm:$0x1]  ;;  %v2159_v57 = vld [vmem:[%s2637_s3 + $0x80] sm:$0xff] }
 0x16b   : > { %2112 = vmatprep.subr.msk.mxu0 %vm522_vm9, %v615_v10 }
 0x16c   : > { %2113 = vmatpush1.msk.msra.mxu0 %vm522_vm9, %v614_v7 }
 0x16d   : > { %v735_v16 = vpop.permute.xlu1 %734  ;;  %2114 = vmatmul.mubr.msk.f32.vlgmr.msra.gmra.mxu0 %vm515_vm10, %v477_v14  ;;  %v1105_v17 = vpop.permute.xlu0 %1104 }
 0x16e   : > { %v739_v19 = vsel %vm738_vm6, %v733_v58, %v735_v16  ;;  %v740_v20 = vsel %vm738_vm6, %v735_v16, %v737_v59  ;;  %696 = vmatprep.mubr.f32.mxu0 %v2225_v1  ;;  %v2160_v58 = vld [vmem:[%s2637_s3 + $0x88] sm:$0x1]  ;;  %v1615_v59 = vld [vmem:[#allocation3 + $0x8] sm:$0x1] }
 0x16f   : > { %2119 = vmatprep.subr.msk.mxu1 %vm522_vm9, %v740_v20  ;;  %v2207_v61 = vpack.i.bf16 %v1808_v60, %v1615_v59 }
 0x170   : > { %2120 = vmatpush1.msk.msra.mxu1 %vm522_vm9, %v739_v19 }
 0x171   : > { %v1101_v23 = vpop.permute.xlu1 %1100  ;;  %2115 = vmatmul.mubr.msk.f32.gmra.mxu0 %vm515_vm10, %v478_v21  ;;  %2121 = vmatmul.mubr.msk.f32.vlgmr.msra.gmra.mxu1 %vm515_vm10, %v2117_v22  ;;  %v864_v24 = vpop.permute.xlu0 %863 }
 0x172   : > { %2133 = vmatprep.subr.msk.mxu1 %vm522_vm9, %v980_v51  ;;  %v868_v25 = vsel %vm867_vm5, %v862_v0, %v864_v24  ;;  %v869_v26 = vsel %vm867_vm5, %v864_v24, %v866_v9  ;;  %821 = vmatprep.mubr.f32.mxu1 %v2225_v1 }
 0x173   : > { %2134 = vmatpush1.msk.msra.mxu1 %vm522_vm9, %v975_v15  ;;  %2126 = vmatprep.subr.msk.mxu0 %vm522_vm9, %v869_v26 }
 0x174   : > { %2127 = vmatpush1.msk.msra.mxu0 %vm522_vm9, %v868_v25  ;;  %944 = vmatprep.mubr.f32.mxu0 %v2225_v1 }
 0x175   : > { %v1232_v29 = vpop.permute.xlu1 %1231  ;;  %2122 = vmatmul.mubr.msk.f32.gmra.mxu1 %vm515_vm10, %v2118_v27  ;;  %2128 = vmatmul.mubr.msk.f32.vlgmr.msra.gmra.mxu0 %vm515_vm10, %v2124_v28  ;;  %v1228_v30 = vpop.permute.xlu0 %1227 }
 0x176   : > { %950 = vmatprep.mubr.f32.mxu0 %v2225_v1  ;;  %1055 = vmatprep.mubr.f32.mxu1 %v2225_v1 }
 0x177   : > { %2208 = vrot.lane.b32.xlu1 %v2207_v61, %s2235_s20 }
 0x179   : > { %v1103_v33 = vpop.permute.xlu1 %1102  ;;  %2129 = vmatmul.mubr.msk.f32.gmra.mxu0 %vm515_vm10, %v2125_v31  ;;  %2135 = vmatmul.mubr.msk.f32.vlgmr.msra.gmra.mxu1 %vm515_vm10, %v2131_v32  ;;  %v1230_v34 = vpop.permute.xlu0 %1229 }
 0x17a   : > { %v1106_v35 = vsel %vm849_vm4, %v1101_v23, %v1103_v33  ;;  %v1107_v36 = vsel %vm849_vm4, %v1103_v33, %v1105_v17  ;;  %v1233_v37 = vsel %vm720_vm3, %v1228_v30, %v1230_v34  ;;  %v1234_v38 = vsel %vm720_vm3, %v1230_v34, %v1232_v29  ;;  %1061 = vmatprep.mubr.f32.mxu1 %v2225_v1 }
 0x17b   : > { %2140 = vmatprep.subr.msk.mxu0 %vm522_vm9, %v1107_v36  ;;  %2147 = vmatprep.subr.msk.mxu1 %vm522_vm9, %v1234_v38 }
 0x17c   : > { %2141 = vmatpush1.msk.msra.mxu0 %vm522_vm9, %v1106_v35  ;;  %1182 = vmatprep.mubr.f32.mxu0 %v2225_v1 }
 0x17d   : > { %2148 = vmatpush1.msk.msra.mxu1 %vm522_vm9, %v1233_v37  ;;  %v1355_v41 = vpop.permute.xlu1 %1354  ;;  %2142 = vmatmul.mubr.msk.f32.vlgmr.msra.gmra.mxu0 %vm515_vm10, %v2138_v39  ;;  %v1359_v42 = vpop.permute.xlu0 %1358 }
 0x17e   : > { %2136 = vmatmul.mubr.msk.f32.gmra.mxu1 %vm515_vm10, %v2132_v40  ;;  %1188 = vmatprep.mubr.f32.mxu0 %v2225_v1 }
 0x17f   : > { %1309 = vmatprep.mubr.f32.mxu1 %v2225_v1  ;;  %2213 = vrot.lane.b32.xlu1 %v2225_v1, %s2235_s20 }
 0x181   : > { %v1357_v45 = vpop.permute.xlu1 %1356  ;;  %2143 = vmatmul.mubr.msk.f32.gmra.mxu0 %vm515_vm10, %v2139_v43  ;;  %v1484_v46 = vpop.permute.xlu0 %1483 }
 0x182   : > { %v1360_v47 = vsel %vm494_vm1, %v1355_v41, %v1357_v45  ;;  %v1361_v48 = vsel %vm494_vm1, %v1357_v45, %v1359_v42  ;;  %2149 = vmatmul.mubr.msk.f32.vlgmr.msra.gmra.mxu1 %vm515_vm10, %v2145_v44  ;;  %1436 = vmatprep.mubr.f32.mxu0 %v2225_v1 }
 0x183   : > { %2154 = vmatprep.subr.msk.mxu0 %vm522_vm9, %v1361_v48  ;;  %1315 = vmatprep.mubr.f32.mxu1 %v2225_v1 }
 0x184   : > { %2155 = vmatpush1.msk.msra.mxu0 %vm522_vm9, %v1360_v47 }
 0x185   : > { %v1486_v52 = vpop.permute.xlu1 %1485  ;;  %2156 = vmatmul.mubr.msk.f32.vlgmr.msra.gmra.mxu0 %vm515_vm10, %v2152_v49  ;;  %v1482_v53 = vpop.permute.xlu0 %1481 }
 0x186   : > { %v1488_v54 = vsel %vm471_vm2, %v1484_v46, %v1486_v52  ;;  %2150 = vmatmul.mubr.msk.f32.gmra.mxu1 %vm515_vm10, %v2146_v50  ;;  %v1487_v55 = vsel %vm471_vm2, %v1482_v53, %v1484_v46  ;;  %1442 = vmatprep.mubr.f32.mxu0 %v2225_v1 }
 0x187   : > { %2161 = vmatprep.subr.msk.mxu1 %vm522_vm9, %v1488_v54  ;;  %1563 = vmatprep.mubr.f32.mxu1 %v2225_v1 }
 0x188   : > { %2162 = vmatpush1.msk.msra.mxu1 %vm522_vm9, %v1487_v55 }
 0x189   : > { %2157 = vmatmul.mubr.msk.f32.gmra.mxu0 %vm515_vm10, %v2153_v56 }
 0x18a   : > { %2163 = vmatmul.mubr.msk.f32.vlgmr.msra.gmra.mxu1 %vm515_vm10, %v2159_v57  ;;  %1695 = vmatprep.mubr.f32.mxu0 %v2225_v1 }
 0x18b   : > { %1569 = vmatprep.mubr.f32.mxu1 %v2225_v1 }
 0x18e   : > { %2164 = vmatmul.mubr.msk.f32.gmra.mxu1 %vm515_vm10, %v2160_v58 }
 0x18f   : > { %1796 = vmatprep.mubr.f32.mxu1 %v2225_v1 }
 0x192   : > { %v1585_v57 = vpop.permute.xlu0 %1584 }
 0x229   : > { %v593_v62 = vpop.f32.mrf.mxu0  ;;  %v599_v0 = vpop.f32.mrf.mxu1 }
 0x22b   : > { %v595_v63 = vpop.f32.mrf.mxu0  ;;  %v601_v3 = vpop.f32.mrf.mxu1 }
 0x22d   : > { %v692_v2 = vpop.f32.mrf.mxu0 }
 0x22e   : > { %v693_v21 = vadd.f32 %v692_v2, %v593_v62 }
 0x22f   : > { %v694_v4 = vpop.f32.mrf.mxu0 }
 0x230   : > { %v695_v23 = vadd.f32 %v694_v4, %v595_v63 }
 0x231   : > { %v698_v5 = vpop.f32.mrf.mxu0  ;;  %v817_v8 = vpop.f32.mrf.mxu1 }
 0x232   : > { %v828_v24 = vadd.f32 %v817_v8, %v693_v21  ;;  %v699_v27 = vadd.f32 %v698_v5, %v599_v0  ;;  %v1590_v8 = vpop.permute.xlu1 %1589 }
 0x233   : > { %v700_v9 = vpop.f32.mrf.mxu0  ;;  %v819_v6 = vpop.f32.mrf.mxu1 }
 0x234   : > { %v829_v28 = vadd.f32 %v819_v6, %v695_v23  ;;  %v701_v32 = vadd.f32 %v700_v9, %v601_v3 }
 0x235   : > { %v823_v7 = vpop.f32.mrf.mxu1  ;;  %v946_v10 = vpop.f32.mrf.mxu0 }
 0x236   : > { %v957_v29 = vadd.f32 %v946_v10, %v828_v24  ;;  %v830_v33 = vadd.f32 %v823_v7, %v699_v27  ;;  %v2165_v24 = vld [vmem:[%s2640_s6 + $0x4] sm:$0xf]  ;;  %v1928_v27 = vld [vmem:[%s2643_s9 + $0x8] sm:$0xff] }
 0x237   : > { %v825_v14 = vpop.f32.mrf.mxu1  ;;  %v948_v15 = vpop.f32.mrf.mxu0 }
 0x238   : > { %v958_v34 = vadd.f32 %v948_v15, %v829_v28  ;;  %v831_v38 = vadd.f32 %v825_v14, %v701_v32  ;;  %v1927_v28 = vld [vmem:[%s2643_s9] sm:$0xff] }
 0x239   : > { %v952_v16 = vpop.f32.mrf.mxu0  ;;  %v1057_v17 = vpop.f32.mrf.mxu1 }
 0x23a   : > { %v1068_v35 = vadd.f32 %v1057_v17, %v957_v29  ;;  %v959_v39 = vadd.f32 %v952_v16, %v830_v33  ;;  %v2209_v29 = vpop.permute.xlu1 %2208 }
 0x23b   : > { %v954_v19 = vpop.f32.mrf.mxu0  ;;  %v1059_v20 = vpop.f32.mrf.mxu1 }
 0x23c   : > { %v1069_v40 = vadd.f32 %v1059_v20, %v958_v34  ;;  %v960_v44 = vadd.f32 %v954_v19, %v831_v38 }
 0x23d   : > { %v1184_v22 = vpop.f32.mrf.mxu0 }
 0x23e   : > { %v1063_v51 = vpop.f32.mrf.mxu1  ;;  %v1195_v41 = vadd.f32 %v1184_v22, %v1068_v35  ;;  %v2210_v35 = vunpack.i.l.bf16 %v2209_v29 }
 0x23f   : > { %v1186_v25 = vpop.f32.mrf.mxu0  ;;  %v1070_v45 = vadd.f32 %v1063_v51, %v959_v39 }
 0x240   : > { %v1065_v26 = vpop.f32.mrf.mxu1  ;;  %v1196_v46 = vadd.f32 %v1186_v25, %v1069_v40  ;;  %v1915_v25 = vld [vmem:[%s2641_s7] sm:$0xf]  ;;  %v2211_v40 = vunpack.i.h.bf16 %v2209_v29 }
 0x241   : > { %v1190_v30 = vpop.f32.mrf.mxu0  ;;  %v1071_v50 = vadd.f32 %v1065_v26, %v960_v44 }
 0x242   : > { %v1311_v31 = vpop.f32.mrf.mxu1  ;;  %v1197_v52 = vadd.f32 %v1190_v30, %v1070_v45  ;;  %v2214_v30 = vpop.permute.xlu1 %2213 }
 0x243   : > { %v1192_v36 = vpop.f32.mrf.mxu0  ;;  %v1322_v47 = vadd.f32 %v1311_v31, %v1195_v41 }
 0x244   : > { %v1313_v37 = vpop.f32.mrf.mxu1  ;;  %v1198_v58 = vadd.f32 %v1192_v36, %v1071_v50  ;;  %v2215_v36 = vunpack.i.l.bf16 %v2214_v30 }
 0x245   : > { %v1438_v42 = vpop.f32.mrf.mxu0  ;;  %v1323_v53 = vadd.f32 %v1313_v37, %v1196_v46  ;;  %v2216_v46 = vunpack.i.h.bf16 %v2214_v30 }
 0x246   : > { %v1317_v43 = vpop.f32.mrf.mxu1  ;;  %v1449_v54 = vadd.f32 %v1438_v42, %v1322_v47  ;;  %v1618_v42 = vld [vmem:[%s2640_s6] sm:$0xf] }
 0x247   : > { %v1440_v48 = vpop.f32.mrf.mxu0  ;;  %v1324_v59 = vadd.f32 %v1317_v43, %v1197_v52  ;;  %v2172_v52 = vld [vmem:[%s2640_s6 + $0x8] sm:$0xf] }
 0x248   : > { %v1319_v49 = vpop.f32.mrf.mxu1  ;;  %v1450_v60 = vadd.f32 %v1440_v48, %v1323_v53 }
 0x249   : > { %v1444_v55 = vpop.f32.mrf.mxu0  ;;  %v1325_v0 = vadd.f32 %v1319_v49, %v1198_v58 }
 0x24a   : > { %v1565_v56 = vpop.f32.mrf.mxu1  ;;  %v1451_v2 = vadd.f32 %v1444_v55, %v1324_v59 }
 0x24b   : > { %v1576_v61 = vadd.f32 %v1565_v56, %v1449_v54  ;;  %v1446_v62 = vpop.f32.mrf.mxu0 }
 0x24c   : > { %v1567_v63 = vpop.f32.mrf.mxu1  ;;  %v1452_v6 = vadd.f32 %v1446_v62, %v1325_v0 }
 0x24d   : > { %v1592_v3 = vadd.f32 %v1585_v57, %v1576_v61  ;;  %v1577_v4 = vadd.f32 %v1567_v63, %v1450_v60 }
 0x24e   : > { %v1571_v5 = vpop.f32.mrf.mxu1 }
 0x24f   : > { %v1596_v9 = vmax.f32 %v1592_v3, 0.0  ;;  %v1593_v7 = vadd.f32 %v1585_v57, %v1577_v4  ;;  %v1578_v10 = vadd.f32 %v1571_v5, %v1451_v2 }
 0x250   : > { %v1573_v14 = vpop.f32.mrf.mxu1 }
 0x251   : > { %v1597_v15 = vmax.f32 %v1593_v7, 0.0  ;;  %v1594_v16 = vadd.f32 %v1590_v8, %v1578_v10  ;;  %v1579_v17 = vadd.f32 %v1573_v14, %v1452_v6  ;;  %1708 = vrot.lane.b32.xlu0 %v1596_v9, %s2235_s20 }
 0x253   : > { %v1598_v19 = vmax.f32 %v1594_v16, 0.0  ;;  %v1595_v20 = vadd.f32 %v1590_v8, %v1579_v17  ;;  %1710 = vrot.lane.b32.xlu1 %v1597_v15, %s2235_s20  ;;  %v1925_v8 = vld [vmem:[%s2642_s8] sm:$0xff] }
 0x255   : > { %1610 = vst [vmem:[#allocation3 + $0x20] sm:$0x1] %v1598_v19  ;;  %v1599_v21 = vmax.f32 %v1595_v20, 0.0 }
 0x257   : > { %1611 = vst [vmem:[#allocation3 + $0x28] sm:$0x1] %v1599_v21 }
 0x25c   : > { %v1806_v22 = vld [vmem:[#allocation3 + $0x20] sm:$0x1] }
 0x25d   : > { %v1616_v51 = vld [vmem:[#allocation3 + $0x20] sm:$0x1]  ;;  %1823 = vrot.lane.b32.xlu0 %v1806_v22, %s2235_s20 }
 0x25e   : > { %1714 = vrot.lane.b32.xlu1 %v1616_v51, %s2235_s20  ;;  %v1617_v23 = vld [vmem:[#allocation3 + $0x28] sm:$0x1] }
 0x25f   : > { %2166 = vmatprep.subr.msk.mxu0 %vm1624_vm11, %v1617_v23  ;;  %v1807_v26 = vld [vmem:[#allocation3 + $0x28] sm:$0x1] }
 0x260   : > { %2167 = vmatpush1.msk.msra.mxu0 %vm1624_vm11, %v1616_v51 }
 0x261   : > { %1661 = vmatprep.subr.mxu0 %v1597_v15  ;;  %1716 = vrot.lane.b32.xlu0 %v1617_v23, %s2235_s20 }
 0x262   : > { %1662 = vmatpush1.msra.mxu0 %v1596_v9  ;;  %1819 = vrot.lane.b32.xlu1 %v1597_v15, %s2235_s20 }
 0x263   : > { %2168 = vmatmul.mubr.msk.f32.vlgmr.msra.gmra.mxu0 %vm613_vm8, %v2165_v24 }
 0x264   : > { %1906 = vmatprep.mubr.f32.mxu0 %v2225_v1 }
 0x265   : > { %1825 = vrot.lane.b32.xlu0 %v1807_v26, %s2235_s20 }
 0x266   : > { %1918 = vperm.xlu1 %2206, %v1915_v25  }
 0x269   : > { %1817 = vrot.lane.b32.xlu0 %v1596_v9, %s2235_s20  ;;  %v1926_v9 = vld [vmem:[%s2642_s8 + $0x8] sm:$0xff] }
 0x26a   : > { %1936 = vperm.xlu1 %2206, %v1928_v27  }
 0x26d   : > { %1931 = vperm.xlu0 %2205, %v1927_v28  }
 0x2c3   : > { %v1709_v31 = vpop.permute.xlu0 %1708 }
 0x2c4   : > { %v1719_v43 = vsel %vm1718_vm12, %v2215_v36, %v1709_v31 }
 0x2c5   : > { %v1711_v32 = vpop.permute.xlu1 %1710 }
 0x2c6   : > { %v1720_v41 = vsel %vm1718_vm12, %v1709_v31, %v1711_v32 }
 0x2cf   : > { %v1824_v33 = vpop.permute.xlu0 %1823 }
 0x2d0   : > { %v1715_v34 = vpop.permute.xlu1 %1714 }
 0x2d1   : > { %v1721_v39 = vsel %vm1718_vm12, %v2210_v35, %v1715_v34 }
 0x2d3   : > { %v1717_v37 = vpop.permute.xlu0 %1716 }
 0x2d4   : > { %v1722_v38 = vsel %vm1718_vm12, %v1715_v34, %v1717_v37  ;;  %v1820_v44 = vpop.permute.xlu1 %1819 }
 0x2d5   : > { %2169 = vmatprep.subr.msk.mxu1 %vm1624_vm11, %v1722_v38  ;;  %v1830_v49 = vsel %vm1718_vm12, %v1820_v44, %v2216_v46 }
 0x2d6   : > { %2170 = vmatpush1.msk.msra.mxu1 %vm1624_vm11, %v1721_v39 }
 0x2d7   : > { %1762 = vmatprep.subr.mxu1 %v1720_v41  ;;  %v1826_v45 = vpop.permute.xlu0 %1825 }
 0x2d8   : > { %v1831_v47 = vsel %vm1718_vm12, %v1824_v33, %v1826_v45  ;;  %v1832_v48 = vsel %vm1718_vm12, %v1826_v45, %v2211_v40  ;;  %1763 = vmatpush1.msra.mxu1 %v1719_v43 }
 0x2d9   : > { %2173 = vmatprep.subr.msk.mxu0 %vm1624_vm11, %v1832_v48  ;;  %2171 = vmatmul.mubr.msk.f32.vlgmr.msra.gmra.mxu1 %vm613_vm8, %v1618_v42 }
 0x2da   : > { %2174 = vmatpush1.msk.msra.mxu0 %vm1624_vm11, %v1831_v47  ;;  %2015 = vmatprep.mubr.f32.mxu1 %v2225_v1 }
 0x2db   : > { %v1818_v50 = vpop.permute.xlu0 %1817  ;;  %1872 = vmatprep.subr.mxu0 %v1830_v49 }
 0x2dc   : > { %v1829_v53 = vsel %vm1718_vm12, %v1818_v50, %v1820_v44 }
 0x2dd   : > { %1873 = vmatpush1.msra.mxu0 %v1829_v53 }
 0x2de   : > { %2175 = vmatmul.mubr.msk.f32.vlgmr.msra.gmra.mxu0 %vm613_vm8, %v2172_v52 }
 0x2e1   : > { %v1919_v63 = vpop.permute.xlu1 %1918 }
 0x2e5   : > { %v1937_v17 = vpop.permute.xlu1 %1936 }
 0x2e8   : > { %v1932_v6 = vpop.permute.xlu0 %1931 }
 0x323   : > { %v1697_v54 = vpop.f32.mrf.mxu0 }
 0x325   : > { %v1699_v56 = vpop.f32.mrf.mxu0 }
 0x399   : > { %v1798_v55 = vpop.f32.mrf.mxu1 }
 0x39a   : > { %v1799_v58 = vadd.f32 %v1798_v55, %v1697_v54 }
 0x39b   : > { %v1800_v57 = vpop.f32.mrf.mxu1 }
 0x39c   : > { %v1801_v60 = vadd.f32 %v1800_v57, %v1699_v56 }
 0x39e   : > { %v1908_v59 = vpop.f32.mrf.mxu0 }
 0x39f   : > { %v1913_v61 = vadd.f32 %v1908_v59, %v1799_v58 }
 0x3a0   : > { %v1910_v62 = vpop.f32.mrf.mxu0 }
 0x3a1   : > { %v1914_v0 = vadd.f32 %v1910_v62, %v1801_v60  ;;  %v1921_v2 = vadd.f32 %v1919_v63, %v1913_v61 }
 0x3a3   : > { %v1922_v3 = vadd.f32 %v1919_v63, %v1914_v0  ;;  %v1923_v5 = vmax.f32 %v1921_v2, 0.0 }
 0x3a5   : > { %v1924_v4 = vmax.f32 %v1922_v3, 0.0 }
 0x3a7   : > { %2176 = vmatprep.subr.msk.mxu1 %vm522_vm9, %v1924_v4 }
 0x3a8   : > { %2177 = vmatpush1.msk.msra.mxu1 %vm522_vm9, %v1923_v5 }
 0x3a9   : > { %2178 = vmatmul.mubr.msk.f32.vlgmr.msra.gmra.mxu1 %vm515_vm10, %v1925_v8 }
 0x3aa   : > { %2021 = vmatprep.mubr.f32.mxu1 %v2225_v1 }
 0x3ad   : > { %2179 = vmatmul.mubr.msk.f32.gmra.mxu1 %vm515_vm10, %v1926_v9 }
 0x469   : > { %v2017_v7 = vpop.f32.mrf.mxu1 }
 0x46a   : > { %v2018_v10 = vadd.f32 %v2017_v7, %v1932_v6 }
 0x46b   : > { %v2019_v14 = vpop.f32.mrf.mxu1 }
 0x46c   : > { %v2028_v15 = vadd.f32 %v2018_v10, %v2345_v18  ;;  %v2020_v16 = vadd.f32 %v2019_v14, %v1932_v6 }
 0x46d   : > { %v2023_v1 = vpop.f32.mrf.mxu1 }
 0x46e   : > { %v2032_v19 = vmax.f32 %v2028_v15, 0.0  ;;  %v2029_v20 = vadd.f32 %v2020_v16, %v2338_v13  ;;  %v2024_v21 = vadd.f32 %v2023_v1, %v1937_v17 }
 0x46f   : > { %v2025_v22 = vpop.f32.mrf.mxu1 }
 0x470   : > { %2036 = vst [vmem:[%s359_s22] sm:$0xff] %v2032_v19  ;;  %v2033_v51 = vmax.f32 %v2029_v20, 0.0  ;;  %v2030_v23 = vadd.f32 %v2024_v21, %v2336_v12  ;;  %v2026_v24 = vadd.f32 %v2025_v22, %v1937_v17 }
 0x472   : > { %2037 = vst [vmem:[%s359_s22 + $0x8] sm:$0xff] %v2033_v51  ;;  %v2034_v18 = vmax.f32 %v2030_v23, 0.0  ;;  %v2031_v25 = vadd.f32 %v2026_v24, %v2334_v11 }
 0x474   : > { %2038 = vst [vmem:[%s359_s22 + $0x10] sm:$0xff] %v2034_v18  ;;  %v2035_v26 = vmax.f32 %v2031_v25, 0.0 }
 0x476   : > { %2039 = vst [vmem:[%s359_s22 + $0x18] sm:$0xff] %v2035_v26 }
 0x477 PF: > { %s20_s13 = sadd.s32 1, %s2223_s13  }
 0x478   : > { %p17_p4 = scmp.ge.s32.totalorder %s20_s13, 4  }
 0x47a   :  { %19 = sbr.rel (!%p17_p4) target bundleno = 1 (0x1), region = 108 }

</bundles_post_ra>
